<compile_context>
chip_gen: v6e
topology: v6e:2x2x1
jax: 0.10.0
libtpu: 0.0.40
codegen_flags: <defaults>
</compile_context>

<pallas_src>
import functools

import jax
import jax.numpy as jnp
from jax import lax
from jax.experimental import pallas as pl
from jax.experimental.pallas import tpu as pltpu


# Tile budgets are derived for the smallest VMEM generation (v7x: 64 MiB).
VMEM_LIMIT_BYTES = 64 * 1024 * 1024


def _pick_tile(n, target, quantum):
    """Largest tile <= target that is a multiple of `quantum` and divides n.

    Falls back to the full dimension (always legal for BlockSpec) if no such
    tile exists or if n <= target.
    """
    if n <= target:
        return n
    t = (target // quantum) * quantum
    while t >= quantum:
        if n % t == 0:
            return t
        t -= quantum
    return n


# ----------------------------------------------------------------------------
# LayerNorm (row tiled)
# ----------------------------------------------------------------------------

def _layernorm_kernel(x_ref, w_ref, b_ref, o_ref):
    x = x_ref[...]                                       # (bm, C)
    mean = jnp.mean(x, axis=-1, keepdims=True)
    var = jnp.mean(jnp.square(x - mean), axis=-1, keepdims=True)
    o_ref[...] = (x - mean) * lax.rsqrt(var + 1e-5) * w_ref[...] + b_ref[...]


def pallas_layernorm(x, w, b):
    N, C = x.shape
    bm = _pick_tile(N, 512, 8)
    return pl.pallas_call(
        _layernorm_kernel,
        grid=(N // bm,),
        in_specs=[pl.BlockSpec((bm, C), lambda i: (i, 0)),
                  pl.BlockSpec((1, C), lambda i: (0, 0)),
                  pl.BlockSpec((1, C), lambda i: (0, 0))],
        out_specs=pl.BlockSpec((bm, C), lambda i: (i, 0)),
        out_shape=jax.ShapeDtypeStruct((N, C), jnp.float32),
        compiler_params=pltpu.CompilerParams(
            dimension_semantics=("parallel",),
            vmem_limit_bytes=VMEM_LIMIT_BYTES),
    )(x, w, b)


# ----------------------------------------------------------------------------
# Fused TimeMixer mixing stage:
#   premix lerp + 5 stacked ddlerp LoRAs + 5 lerps + r/k/v/gate projections
#   + decay LoRA + decay = exp(-exp(.))   (all in one row x col tiled kernel)
# ----------------------------------------------------------------------------

def _tm_mix_kernel(xn_ref, xs_ref, premix_ref, ddb_ref, ddwa_ref, ddwb_ref,
                   wr_ref, wk_ref, wv_ref, wg_ref,
                   decb_ref, decwa_ref, decwb_ref,
                   r_ref, k_ref, v_ref, g_ref, d_ref, *, rank):
    x = xn_ref[...]                                      # (bm, C)
    xs = xs_ref[...]
    dx = xs - x
    xp = x + premix_ref[...] * dx                        # premix lerp

    # One fused A-projection for all five ddlerp LoRAs: (bm, C) @ (C, 5R)
    hid = jnp.tanh(jnp.dot(xp, ddwa_ref[...],
                           preferred_element_type=jnp.float32))

    def ddlerp(i):
        base = ddb_ref[pl.ds(i, 1), :]                   # (1, C)
        mix = base + jnp.dot(hid[:, i * rank:(i + 1) * rank], ddwb_ref[i],
                             preferred_element_type=jnp.float32)
        return x + mix * dx                              # lerp(x, xs, mix)

    x_decay = ddlerp(0)
    x_key = ddlerp(1)
    x_value = ddlerp(2)
    x_recep = ddlerp(3)
    x_gate = ddlerp(4)

    r_ref[...] = jnp.dot(x_recep, wr_ref[...], preferred_element_type=jnp.float32)
    k_ref[...] = jnp.dot(x_key, wk_ref[...], preferred_element_type=jnp.float32)
    v_ref[...] = jnp.dot(x_value, wv_ref[...], preferred_element_type=jnp.float32)
    g_ref[...] = jnp.dot(x_gate, wg_ref[...], preferred_element_type=jnp.float32)

    lh = jnp.tanh(jnp.dot(x_decay, decwa_ref[...],
                          preferred_element_type=jnp.float32))
    log_neglog = decb_ref[...] + jnp.dot(lh, decwb_ref[...],
                                         preferred_element_type=jnp.float32)
    # decay hoisted out of the serial WKV loop (bulk elementwise, EUP slot)
    d_ref[...] = jnp.exp(-jnp.exp(log_neglog))


def pallas_tm_mix(xn, xs, premix, dd_base, dd_wa, dd_wb,
                  w_r, w_k, w_v, w_g, dec_base, dec_wa, dec_wb):
    N, C = xn.shape
    rank = dd_wb.shape[1]
    r5 = dd_wa.shape[1]
    rd = dec_wa.shape[1]
    bm = _pick_tile(N, 256, 8)
    tn = _pick_tile(C, 512, 128)
    grid = (N // bm, C // tn)

    rows = pl.BlockSpec((bm, C), lambda i, j: (i, 0))
    col_out = pl.BlockSpec((bm, tn), lambda i, j: (i, j))
    w_col = pl.BlockSpec((C, tn), lambda i, j: (0, j))

    in_specs = [
        rows, rows,                                          # xn, xs
        pl.BlockSpec((1, C), lambda i, j: (0, 0)),           # premix
        pl.BlockSpec((5, C), lambda i, j: (0, 0)),           # dd_base (stacked)
        pl.BlockSpec((C, r5), lambda i, j: (0, 0)),          # dd_wa (concat)
        pl.BlockSpec((5, rank, C), lambda i, j: (0, 0, 0)),  # dd_wb (stacked)
        w_col, w_col, w_col, w_col,                          # w_r, w_k, w_v, w_g
        pl.BlockSpec((1, tn), lambda i, j: (0, j)),          # decay base
        pl.BlockSpec((C, rd), lambda i, j: (0, 0)),          # decay W_a
        pl.BlockSpec((rd, tn), lambda i, j: (0, j)),         # decay W_b
    ]
    out_shape = jax.ShapeDtypeStruct((N, C), jnp.float32)
    kernel = functools.partial(_tm_mix_kernel, rank=rank)
    return pl.pallas_call(
        kernel,
        grid=grid,
        in_specs=in_specs,
        out_specs=(col_out,) * 5,
        out_shape=(out_shape,) * 5,
        compiler_params=pltpu.CompilerParams(
            dimension_semantics=("parallel", "parallel"),
            vmem_limit_bytes=VMEM_LIMIT_BYTES),
    )(xn, xs, premix, dd_base, dd_wa, dd_wb, w_r, w_k, w_v, w_g,
      dec_base, dec_wa, dec_wb)


# ----------------------------------------------------------------------------
# WKV recurrence, chunked over time: grid (B, T // Tc), timestep loop inside.
# kv_state lives in a f32 VMEM scratch across chunks and is aliased in->out.
# ----------------------------------------------------------------------------

def _wkv_kernel(r_ref, k_ref, v_ref, d_ref, u_ref, s_ref,
                o_ref, s_out_ref, st_ref, *, Tc):
    c = pl.program_id(1)

    @pl.when(c == 0)
    def _():
        st_ref[...] = s_ref[0]                           # load incoming kv_state

    u = u_ref[...]                                       # (H, K) bonus

    def step(t, carry):
        r_t = r_ref[0, t]                                # (H, K)
        k_t = k_ref[0, t]
        v_t = v_ref[0, t]
        w_t = d_ref[0, t]                                # decay, already exp(-exp(.))
        kv = k_t[:, :, None] * v_t[:, None, :]           # (H, K, V) outer product
        y = st_ref[...] + kv * u[:, :, None]
        o_ref[0, t] = jnp.sum(r_t[:, :, None] * y, axis=1)   # r @ y -> (H, V)
        st_ref[...] = st_ref[...] * w_t[:, :, None] + kv
        return carry

    lax.fori_loop(0, Tc, step, 0)

    @pl.when(c == pl.num_programs(1) - 1)
    def _():
        s_out_ref[0] = st_ref[...]


def pallas_wkv(r, k, v, decay, bonus, kv_state):
    # TODO(synk): switch to the chunked (matmul-based) linear-attention
    # formulation with lane-dense (B, Tc, C) blocks to move this onto the MXU.
    B, T, H, K = r.shape
    Tc = _pick_tile(T, 256, 8)
    nc = T // Tc
    seq = pl.BlockSpec((1, Tc, H, K), lambda b, c: (b, c, 0, 0))
    u_spec = pl.BlockSpec((H, K), lambda b, c: (0, 0))
    s_spec = pl.BlockSpec((1, H, K, K), lambda b, c: (b, 0, 0, 0))
    kernel = functools.partial(_wkv_kernel, Tc=Tc)
    return pl.pallas_call(
        kernel,
        grid=(B, nc),
        in_specs=[seq, seq, seq, seq, u_spec, s_spec],
        out_specs=(seq, s_spec),
        out_shape=(jax.ShapeDtypeStruct((B, T, H, K), jnp.float32),
                   jax.ShapeDtypeStruct((B, H, K, K), jnp.float32)),
        scratch_shapes=[pltpu.VMEM((H, K, K), jnp.float32)],
        input_output_aliases={5: 1},
        compiler_params=pltpu.CompilerParams(
            dimension_semantics=("parallel", "arbitrary"),
            vmem_limit_bytes=VMEM_LIMIT_BYTES),
    )(r, k, v, decay, bonus, kv_state)


# ----------------------------------------------------------------------------
# Fused GroupNorm (per-group stats via tiny (C,H)/(H,C) matrices, no (C,C)
# mask) + silu gating + output projection w_o + residual add.
# ----------------------------------------------------------------------------

def _gn_silu_out_kernel(y_ref, g_ref, msum_ref, mexp_ref, w_ref, b_ref,
                        wo_ref, h_ref, o_ref, *, eps):
    y = y_ref[...]                                       # (bm, C)
    msum = msum_ref[...]                                 # (C, H): group mean
    mexp = mexp_ref[...]                                 # (H, C): expand back
    mean = jnp.dot(jnp.dot(y, msum, preferred_element_type=jnp.float32),
                   mexp, preferred_element_type=jnp.float32)
    yc = y - mean
    var = jnp.dot(jnp.dot(yc * yc, msum, preferred_element_type=jnp.float32),
                  mexp, preferred_element_type=jnp.float32)
    yn = yc * lax.rsqrt(var + eps)
    yn = yn * w_ref[...] + b_ref[...]
    g = g_ref[...]
    act = yn * (g * jax.nn.sigmoid(g))                   # out * silu(gate)
    o_ref[...] = h_ref[...] + jnp.dot(act, wo_ref[...],
                                      preferred_element_type=jnp.float32)


def pallas_gn_silu_out(y, gate, msum, mexp, gn_w, gn_b, w_o, h_res,
                       eps=0.00064):
    N, C = y.shape
    H = msum.shape[1]
    bm = _pick_tile(N, 256, 8)
    tn = _pick_tile(C, 512, 128)
    grid = (N // bm, C // tn)
    rows = pl.BlockSpec((bm, C), lambda i, j: (i, 0))
    vec = pl.BlockSpec((1, C), lambda i, j: (0, 0))
    kernel = functools.partial(_gn_silu_out_kernel, eps=eps)
    return pl.pallas_call(
        kernel,
        grid=grid,
        in_specs=[rows, rows,
                  pl.BlockSpec((C, H), lambda i, j: (0, 0)),
                  pl.BlockSpec((H, C), lambda i, j: (0, 0)),
                  vec, vec,
                  pl.BlockSpec((C, tn), lambda i, j: (0, j)),
                  pl.BlockSpec((bm, tn), lambda i, j: (i, j))],
        out_specs=pl.BlockSpec((bm, tn), lambda i, j: (i, j)),
        out_shape=jax.ShapeDtypeStruct((N, C), jnp.float32),
        compiler_params=pltpu.CompilerParams(
            dimension_semantics=("parallel", "parallel"),
            vmem_limit_bytes=VMEM_LIMIT_BYTES),
    )(y, gate, msum, mexp, gn_w, gn_b, w_o, h_res)


# ----------------------------------------------------------------------------
# ChannelMixer core: token-shift lerps + W_in -> relu^2 -> W_out (d_ffn is a
# grid reduction axis with an f32 accumulator) + sigmoid gate + residual.
# ----------------------------------------------------------------------------

def _cm_kernel(xn_ref, xs_ref, tsi_ref, tsg_ref, win_ref, wout_ref, wg_ref,
               h_ref, o_ref, acc_ref):
    f = pl.program_id(1)

    @pl.when(f == 0)
    def _():
        acc_ref[...] = jnp.zeros_like(acc_ref)

    x = xn_ref[...]
    xs = xs_ref[...]
    x_in = x + tsi_ref[...] * (xs - x)
    hidden = jnp.dot(x_in, win_ref[...], preferred_element_type=jnp.float32)
    hidden = jnp.square(jnp.maximum(hidden, 0.0))
    acc_ref[...] += jnp.dot(hidden, wout_ref[...],
                            preferred_element_type=jnp.float32)

    @pl.when(f == pl.num_programs(1) - 1)
    def _():
        x_gate = x + tsg_ref[...] * (xs - x)
        gate = jnp.dot(x_gate, wg_ref[...], preferred_element_type=jnp.float32)
        o_ref[...] = h_ref[...] + acc_ref[...] * jax.nn.sigmoid(gate)


def pallas_cm(xn, xs, ts_in, ts_gate, w_in, w_out, w_gate, h_res):
    N, C = xn.shape
    F = w_in.shape[1]
    bm = _pick_tile(N, 256, 8)
    tf = _pick_tile(F, 512, 128)
    grid = (N // bm, F // tf)
    rows = pl.BlockSpec((bm, C), lambda i, f: (i, 0))
    vec = pl.BlockSpec((1, C), lambda i, f: (0, 0))
    return pl.pallas_call(
        _cm_kernel,
        grid=grid,
        in_specs=[rows, rows, vec, vec,
                  pl.BlockSpec((C, tf), lambda i, f: (0, f)),
                  pl.BlockSpec((tf, C), lambda i, f: (f, 0)),
                  pl.BlockSpec((C, C), lambda i, f: (0, 0)),   # TODO(synk): col-tile w_gate at large C
                  rows],
        out_specs=rows,
        out_shape=jax.ShapeDtypeStruct((N, C), jnp.float32),
        scratch_shapes=[pltpu.VMEM((bm, C), jnp.float32)],
        compiler_params=pltpu.CompilerParams(
            dimension_semantics=("parallel", "arbitrary"),
            vmem_limit_bytes=VMEM_LIMIT_BYTES),
    )(xn, xs, ts_in, ts_gate, w_in, w_out, w_gate, h_res)


# ----------------------------------------------------------------------------
# Parameters (deterministic synthetic init; linear weights stored as (in, out))
# ----------------------------------------------------------------------------

def init_params(key, d_model, n_heads, d_ffn, dd_rank, dec_rank):
    K = d_model // n_heads
    keys = iter(jax.random.split(key, 32))

    def nrm(shape, scale):
        return jax.random.normal(next(keys), shape, jnp.float32) * scale

    s_c = d_model ** -0.5
    p = {
        # --- TimeMixer ---
        "tm_ln_w": jnp.ones((1, d_model), jnp.float32),
        "tm_ln_b": jnp.zeros((1, d_model), jnp.float32),
        "ddlerp_premix": nrm((1, d_model), 0.1),
        # stacked ddlerp LoRAs, branch order: decay, key, value, receptance, gate
        "dd_base": nrm((5, d_model), 0.1),
        "dd_wa": nrm((d_model, 5 * dd_rank), s_c),
        "dd_wb": nrm((5, dd_rank, d_model), dd_rank ** -0.5),
        # decay LoRA
        "decay_base": nrm((1, d_model), 0.1),
        "decay_wa": nrm((d_model, dec_rank), s_c),
        "decay_wb": nrm((dec_rank, d_model), dec_rank ** -0.5),
        "w_r": nrm((d_model, d_model), s_c),
        "w_k": nrm((d_model, d_model), s_c),
        "w_v": nrm((d_model, d_model), s_c),
        "w_g": nrm((d_model, d_model), s_c),
        "w_o": nrm((d_model, d_model), s_c),
        "bonus": jnp.ones((n_heads, K), jnp.float32),
        "gn_w": jnp.ones((1, d_model), jnp.float32),
        "gn_b": jnp.zeros((1, d_model), jnp.float32),
        # --- ChannelMixer ---
        "cm_ln_w": jnp.ones((1, d_model), jnp.float32),
        "cm_ln_b": jnp.zeros((1, d_model), jnp.float32),
        "ts_in": nrm((1, d_model), 0.1),
        "ts_gate": nrm((1, d_model), 0.1),
        "w_in": nrm((d_model, d_ffn), s_c),
        "w_out": nrm((d_ffn, d_model), d_ffn ** -0.5),
        "w_cm_gate": nrm((d_model, d_model), s_c),
    }
    # Small group-sum / group-expand matrices replacing the dense (C, C) mask.
    grp = jnp.arange(d_model) // K                            # (C,)
    onehot = (grp[:, None] == jnp.arange(n_heads)[None, :]).astype(jnp.float32)
    p["gn_msum"] = onehot / K                                 # (C, H)
    p["gn_mexp"] = onehot.T                                   # (H, C)
    return p


# ----------------------------------------------------------------------------
# Module forwards (thin JAX glue; all heavy compute in Pallas)
# ----------------------------------------------------------------------------

def time_mixer_forward(p, h, x_state, kv_state, n_heads):
    B, T, C = h.shape
    K = C // n_heads
    xn = pallas_layernorm(h.reshape(B * T, C), p["tm_ln_w"], p["tm_ln_b"])
    xn = xn.reshape(B, T, C)
    x_state_out = xn[:, -1]
    # TODO(synk): fold the token-shift construction into the Pallas kernels to
    # avoid this extra (B, T, C) HBM slab.
    x_shift = jnp.concatenate([x_state[:, None, :], xn[:, :-1]], axis=1)

    r, k, v, gate, decay = pallas_tm_mix(
        xn.reshape(B * T, C), x_shift.reshape(B * T, C),
        p["ddlerp_premix"], p["dd_base"], p["dd_wa"], p["dd_wb"],
        p["w_r"], p["w_k"], p["w_v"], p["w_g"],
        p["decay_base"], p["decay_wa"], p["decay_wb"])

    r4 = r.reshape(B, T, n_heads, K)
    k4 = k.reshape(B, T, n_heads, K)
    v4 = v.reshape(B, T, n_heads, K)
    d4 = decay.reshape(B, T, n_heads, K)

    wkv, kv_state_out = pallas_wkv(r4, k4, v4, d4, p["bonus"], kv_state)

    out = pallas_gn_silu_out(wkv.reshape(B * T, C), gate,
                             p["gn_msum"], p["gn_mexp"],
                             p["gn_w"], p["gn_b"], p["w_o"],
                             h.reshape(B * T, C))
    return out.reshape(B, T, C), x_state_out, kv_state_out


def channel_mixer_forward(p, h, x_state):
    B, T, C = h.shape
    xn = pallas_layernorm(h.reshape(B * T, C), p["cm_ln_w"], p["cm_ln_b"])
    xn = xn.reshape(B, T, C)
    x_state_out = xn[:, -1]
    x_shift = jnp.concatenate([x_state[:, None, :], xn[:, :-1]], axis=1)
    out = pallas_cm(xn.reshape(B * T, C), x_shift.reshape(B * T, C),
                    p["ts_in"], p["ts_gate"],
                    p["w_in"], p["w_out"], p["w_cm_gate"],
                    h.reshape(B * T, C))
    return out.reshape(B, T, C), x_state_out


def layer_forward(p, x, tm_x_state, cm_x_state, kv_state, n_heads):
    x, tm_x_state, kv_state = time_mixer_forward(p, x, tm_x_state, kv_state,
                                                 n_heads)
    x, cm_x_state = channel_mixer_forward(p, x, cm_x_state)
    return x, tm_x_state, cm_x_state, kv_state


# ----------------------------------------------------------------------------

if __name__ == "__main__":
    B, T, d_model, n_heads = 2, 8, 32, 4
    K = d_model // n_heads
    d_ffn = int(d_model * 3.5) // 32 * 32                 # 96
    dd_rank, dec_rank = 32, 64                            # LoRA ranks (d_model < 4096)

    key = jax.random.PRNGKey(0)
    k_params, k_x, k_tm, k_cm, k_kv = jax.random.split(key, 5)
    params = init_params(k_params, d_model, n_heads, d_ffn, dd_rank, dec_rank)

    x = jax.random.normal(k_x, (B, T, d_model), jnp.float32)
    tm_x_state = jax.random.normal(k_tm, (B, d_model), jnp.float32)
    cm_x_state = jax.random.normal(k_cm, (B, d_model), jnp.float32)
    kv_state = jax.random.normal(k_kv, (B, n_heads, K, K), jnp.float32) * 0.1

    out, tm_s, cm_s, kv_s = layer_forward(params, x, tm_x_state, cm_x_state,
                                          kv_state, n_heads)
    jax.block_until_ready((out, tm_s, cm_s, kv_s))
    assert out.shape == (B, T, d_model)
    assert tm_s.shape == (B, d_model) and cm_s.shape == (B, d_model)
    assert kv_s.shape == (B, n_heads, K, K)
    print("KERNEL_OK")
</pallas_src>

<mosaic_0001>
module attributes {stable_mosaic.version = 11 : i64} {
  func.func @_layernorm_kernel(%arg0: i32, %arg1: memref<16x32xf32, #tpu.memory_space<vmem>>, %arg2: memref<1x32xf32, #tpu.memory_space<vmem>>, %arg3: memref<1x32xf32, #tpu.memory_space<vmem>>, %arg4: memref<16x32xf32, #tpu.memory_space<vmem>>) attributes {dimension_semantics = [#tpu.dimension_semantics<parallel>], iteration_bounds = array<i64: 1>, scalar_prefetch = 0 : i64, scratch_operands = 0 : i64, tpu.core_type = #tpu.core_type<tc>, window_params = [{transform_indices = @transform_0, window_bounds = array<i64: 16, 32>}, {pipeline_mode = #tpu.pipeline_mode<synchronous>, transform_indices = @transform_1, window_bounds = array<i64: 1, 32>}, {pipeline_mode = #tpu.pipeline_mode<synchronous>, transform_indices = @transform_2, window_bounds = array<i64: 1, 32>}, {transform_indices = @transform_3, window_bounds = array<i64: 16, 32>}]} {
    %c0 = arith.constant 0 : index
    %c0_0 = arith.constant 0 : index
    %0 = vector.load %arg1[%c0, %c0_0] : memref<16x32xf32, #tpu.memory_space<vmem>>, vector<16x32xf32>
    %cst = arith.constant dense<0.000000e+00> : vector<16xf32>
    %1 = vector.multi_reduction <add>, %0, %cst [1] : vector<16x32xf32> to vector<16xf32>
    %2 = vector.shape_cast %1 : vector<16xf32> to vector<16x1xf32>
    %cst_1 = arith.constant 3.200000e+01 : f32
    %3 = vector.broadcast %cst_1 : f32 to vector<16x1xf32>
    %4 = arith.divf %2, %3 : vector<16x1xf32>
    %5 = vector.broadcast %4 : vector<16x1xf32> to vector<16x32xf32>
    %6 = arith.subf %0, %5 : vector<16x32xf32>
    %7 = arith.mulf %6, %6 : vector<16x32xf32>
    %cst_2 = arith.constant dense<0.000000e+00> : vector<16xf32>
    %8 = vector.multi_reduction <add>, %7, %cst_2 [1] : vector<16x32xf32> to vector<16xf32>
    %9 = vector.shape_cast %8 : vector<16xf32> to vector<16x1xf32>
    %cst_3 = arith.constant 3.200000e+01 : f32
    %10 = vector.broadcast %cst_3 : f32 to vector<16x1xf32>
    %11 = arith.divf %9, %10 : vector<16x1xf32>
    %12 = vector.broadcast %4 : vector<16x1xf32> to vector<16x32xf32>
    %13 = arith.subf %0, %12 : vector<16x32xf32>
    %cst_4 = arith.constant 9.99999974E-6 : f32
    %14 = vector.broadcast %cst_4 : f32 to vector<16x1xf32>
    %15 = arith.addf %11, %14 : vector<16x1xf32>
    %16 = math.rsqrt %15 : vector<16x1xf32>
    %17 = vector.broadcast %16 : vector<16x1xf32> to vector<16x32xf32>
    %18 = arith.mulf %13, %17 : vector<16x32xf32>
    %c0_5 = arith.constant 0 : index
    %c0_6 = arith.constant 0 : index
    %19 = vector.load %arg2[%c0_5, %c0_6] : memref<1x32xf32, #tpu.memory_space<vmem>>, vector<1x32xf32>
    %20 = vector.broadcast %19 : vector<1x32xf32> to vector<16x32xf32>
    %21 = arith.mulf %18, %20 : vector<16x32xf32>
    %c0_7 = arith.constant 0 : index
    %c0_8 = arith.constant 0 : index
    %22 = vector.load %arg3[%c0_7, %c0_8] : memref<1x32xf32, #tpu.memory_space<vmem>>, vector<1x32xf32>
    %23 = vector.broadcast %22 : vector<1x32xf32> to vector<16x32xf32>
    %24 = arith.addf %21, %23 : vector<16x32xf32>
    %c0_9 = arith.constant 0 : index
    %c0_10 = arith.constant 0 : index
    %25 = vector.load %arg4[%c0_9, %c0_10] : memref<16x32xf32, #tpu.memory_space<vmem>>, vector<16x32xf32>
    tpu.vector_store %arg4[%c0_9, %c0_10], %24 {strides = array<i32>} : memref<16x32xf32, #tpu.memory_space<vmem>>, vector<16x32xf32>,
    return
  }
  func.func @transform_0(%arg0: i32) -> (i32, i32) {
    %c0_i32 = arith.constant 0 : i32
    %c0_i32_0 = arith.constant 0 : i32
    return %arg0, %c0_i32 : i32, i32
  }
  func.func @transform_1(%arg0: i32) -> (i32, i32) {
    %c0_i32 = arith.constant 0 : i32
    %c0_i32_0 = arith.constant 0 : i32
    %c0_i32_1 = arith.constant 0 : i32
    return %c0_i32, %c0_i32_0 : i32, i32
  }
  func.func @transform_2(%arg0: i32) -> (i32, i32) {
    %c0_i32 = arith.constant 0 : i32
    %c0_i32_0 = arith.constant 0 : i32
    %c0_i32_1 = arith.constant 0 : i32
    return %c0_i32, %c0_i32_0 : i32, i32
  }
  func.func @transform_3(%arg0: i32) -> (i32, i32) {
    %c0_i32 = arith.constant 0 : i32
    %c0_i32_0 = arith.constant 0 : i32
    return %arg0, %c0_i32 : i32, i32
  }
}

</mosaic_0001>

<bundles_post_ra>
// kernel: tpu_custom_call.1
= control target key start
LH: loop header
LB: loop body
LE: loop exit
PB: predicated region body
PF: predicated region fallthrough
CT: control target
= control target key end

     0   :  { %8 = vsyncpa [#allocation3], 0  ;;  %s198_s0 = inlined_call_operand.hbm [shape: f32[16,32], index: 0, kind: input, shape index: {}]   ;;  %s199_s1 = inlined_call_operand.vmem [shape: f32[1,32], index: 1, kind: input, shape index: {}]   ;;  %s200_s2 = inlined_call_operand.vmem [shape: f32[1,32], index: 2, kind: input, shape index: {}]   ;;  %s201_s3 = inlined_call_operand.hbm [shape: f32[16,32], index: 3, kind: output, shape index: {}]  }
   0x1   :  { %9 = vsyncpa [#allocation4], 0  ;;  %s150_s12 = smov [#allocation2]  }
   0x2   :  { %s15_s13 = sshll.u32 %s150_s12, 4  ;;  %s16_s13 = int_to_ptr.vmem [resolvable:$true] %s15_s13 }
   0x3   :  { %s114_s14 = scalar_lea.vmem %s16_s13, 256  ;;  %p119_p1 = scmp.lt.s32.totalorder %s16_s13, %s16_s13 }
   0x4   :  { %p115_p0 = scmp.ne.s32.totalorder %s16_s13, %s114_s14  ;;  %p120_p2 = scmp.lt.s32.totalorder %s114_s14, %s114_s14 }
   0x6   :  { %p121_p3 = por %p120_p2, %p119_p1 }
   0x8   :  { %p122_p4 = pnand %p121_p3, %p115_p0 }
   0xa   :  { %125 = shalt.err (!%p122_p4)
}
   0xb   :  { %s151_s15 = smov 128   ;;  %s152_s16 = smov 8  }
   0xc   :  { %21 = dma.hbm_to_vmem [thread:$0]  %s198_s0, 256, %s16_s13, [#allocation3], %s151_s15, %s151_s15, %s152_s16  }
   0xd   :  { %146 = dma.done.wait [#allocation3], 256  }
   0xe   :  { %147 = vsyncadd [#allocation3], 4294967040  ;;  %vm31_vm0 = vcmask 261120   ;;  %v29_v0 = vld [vmem:[#allocation2] sm:$0xff]  ;;  %v30_v1 = vld [vmem:[#allocation2 + $0x8] sm:$0xff]  ;;  %s153_s22 = smov [#allocation5]  }
   0xf   :  { %v32_v2 = vsel %vm31_vm0, %v29_v0, 0.0  ;;  %v35_v3 = vsel %vm31_vm0, %v30_v1, 0.0  ;;  %v96_v21 = vld [vmem:[%s199_s1] ss:$0 sm:$0xff]  ;;  %s84_s23 = sshll.u32 %s153_s22, 4  ;;  %s85_s23 = int_to_ptr.vmem [resolvable:$true] %s84_s23 }
  0x10   :  { %33 = vadd.xlane.f32.xlu0 %v32_v2  ;;  %v97_v23 = vld [vmem:[%s200_s2] ss:$0 sm:$0xff]  ;;  %s126_s24 = scalar_lea.vmem %s85_s23, 256  ;;  %p131_p6 = scmp.lt.s32.totalorder %s85_s23, %s85_s23 }
  0x11   :  { %p127_p5 = scmp.ne.s32.totalorder %s85_s23, %s126_s24  ;;  %p132_p7 = scmp.lt.s32.totalorder %s126_s24, %s126_s24 }
  0x13   :  { %p133_p8 = por %p132_p7, %p131_p6 }
  0x14   :  { %36 = vadd.xlane.f32.xlu0 %v35_v3 }
  0x15   :  { %p134_p9 = pnand %p133_p8, %p127_p5 }
  0x99   :  { %v34_v4 = vpop.xlane.xlu0 %33 }
  0x9a   :  { %v39_v5 = vmul.f32 0.03125, %v34_v4 }
  0x9c   :  { %v41_v6 = vsub.f32 %v29_v0, %v39_v5 }
  0x9d   :  { %v37_v7 = vpop.xlane.xlu0 %36 }
  0x9e   :  { %v40_v8 = vmul.f32 0.03125, %v37_v7  ;;  %v43_v9 = vmul.f32 %v41_v6, %v41_v6 }
  0xa0   :  { %v42_v10 = vsub.f32 %v30_v1, %v40_v8  ;;  %v45_v11 = vsel %vm31_vm0, %v43_v9, 0.0 }
  0xa1   :  { %46 = vadd.xlane.f32.xlu1 %v45_v11 }
  0xa2   :  { %v44_v12 = vmul.f32 %v42_v10, %v42_v10 }
  0xa4   :  { %v48_v13 = vsel %vm31_vm0, %v44_v12, 0.0 }
  0xa5   :  { %49 = vadd.xlane.f32.xlu1 %v48_v13 }
 0x12a   :  { %v47_v14 = vpop.xlane.xlu1 %46 }
 0x12b   :  { %v51_v15 = vmul.f32 0.03125, %v47_v14 }
 0x12d   :  { %v53_v16 = vadd.f32 1e-05, %v51_v15 }
 0x12e   :  { %v50_v17 = vpop.xlane.xlu1 %49 }
 0x12f   :  { %102 = vrsqrt.f32 %v53_v16  ;;  %v52_v18 = vmul.f32 0.03125, %v50_v17 }
 0x131   :  { %v54_v19 = vadd.f32 1e-05, %v52_v18 }
 0x133   :  { %104 = vrsqrt.f32 %v54_v19 }
 0x13c   :  { %v103_v20 = vpop.eup %102 }
 0x13d   :  { %v57_v22 = vmul.f32 %v103_v20, %v41_v6 }
 0x13f   :  { %v66_v24 = vmul.f32 %v96_v21, %v57_v22 }
 0x140   :  { %v105_v25 = vpop.eup %104 }
 0x141   :  { %v58_v26 = vmul.f32 %v105_v25, %v42_v10  ;;  %v75_v27 = vadd.f32 %v97_v23, %v66_v24 }
 0x143   :  { %v67_v28 = vmul.f32 %v96_v21, %v58_v26  ;;  %77 = vst.msk [vmem:[#allocation5] sm:$0xff] %vm31_vm0, %v75_v27 }
 0x145   :  { %v76_v29 = vadd.f32 %v97_v23, %v67_v28 }
 0x147   :  { %78 = vst.msk [vmem:[#allocation5 + $0x8] sm:$0xff] %vm31_vm0, %v76_v29 }
 0x148   :  { %137 = shalt.err (!%p134_p9)
}
 0x149   :  { %90 = dma.vmem_to_hbm [thread:$0]  %s85_s23, 256, %s201_s3, [#allocation4], %s151_s15, %s151_s15, %s152_s16  }
 0x14a   :  { %148 = dma.done.wait [#allocation4], 256  }
 0x14b   :  { %149 = vsyncadd [#allocation4], 4294967040 }
 0x14c   :  { %94 = vsyncpa [#allocation3], 1 }
 0x14d   :  { %95 = vsyncpa [#allocation4], 1 }

</bundles_post_ra>
